<compile_context>
chip_gen: v5e
topology: v5e:2x2
jax: 0.10.0
libtpu: 0.0.40
codegen_flags: <defaults>
</compile_context>

<pallas_src>
import math
from functools import partial

import jax
import jax.numpy as jnp
from jax.experimental import pallas as pl
from jax.experimental.pallas import tpu as pltpu


def _round_up(x, m):
    return ((x + m - 1) // m) * m


def _pick_k_tile(h, target=512):
    """K-tile over the contraction dim H: multiple of 128 that divides H."""
    if h <= target:
        return h
    for cand in (target, 384, 256, 128):
        if h % cand == 0:
            return cand
    return h


# ---------------------------------------------------------------------------
# Pallas expert kernel
# ---------------------------------------------------------------------------
def _moe_expert_kernel(x_ref, s_ref, wgu_ref, wd_ref, bgu_ref, bd_ref,
                       y_ref, gu_acc):
    """One (token-tile, expert, H-k-tile) grid cell.

    The fp32 output block (index map (t, 0)) is resident across the expert and
    K axes, so it doubles as the combine accumulator.
    """
    e = pl.program_id(1)
    k = pl.program_id(2)
    nk = pl.num_programs(2)

    @pl.when(jnp.logical_and(e == 0, k == 0))
    def _():
        y_ref[...] = jnp.zeros_like(y_ref)

    @pl.when(k == 0)
    def _():
        gu_acc[...] = jnp.zeros_like(gu_acc)

    # fused gate|up partial matmul over this H slice (bf16 in, fp32 accumulate)
    gu_acc[...] += jnp.dot(x_ref[...], wgu_ref[...],
                           preferred_element_type=jnp.float32)

    # at the last K step: bias, GLU, down projection, score-weighted combine
    @pl.when(k == nk - 1)
    def _():
        gu = gu_acc[...] + bgu_ref[...]                       # fp32 [TN, 2D]
        d = wd_ref.shape[0]
        g = gu[:, :d]
        u = gu[:, d:]
        hidden = (jax.nn.silu(g) * u).astype(jnp.bfloat16)     # bf16 [TN, D]
        out = jnp.dot(hidden, wd_ref[...],
                      preferred_element_type=jnp.float32) + bd_ref[...]
        # select this expert's score column from the dense [TN, E] block
        lane = jax.lax.broadcasted_iota(jnp.int32, s_ref.shape, 1)
        s_col = jnp.sum(jnp.where(lane == e, s_ref[...], 0.0),
                        axis=1, keepdims=True)                 # fp32 [TN, 1]
        y_ref[...] += s_col * out


def moe_experts_pallas(x_bf16, scores, w_gu, w_down, b_gu, b_down, tn, tk):
    """x_bf16: [N_pad, H] bf16, scores: [N_pad, E] fp32 (already scaled),
    w_gu: [E, H, 2*Dp] bf16, w_down: [E, Dp, OUTp] bf16, biases fp32."""
    n_pad, h = x_bf16.shape
    e_cnt, _, d2 = w_gu.shape
    d_pad, out_pad = w_down.shape[1], w_down.shape[2]
    t_cnt = n_pad // tn
    kh_cnt = h // tk

    grid_spec = pltpu.PrefetchScalarGridSpec(
        num_scalar_prefetch=0,
        grid=(t_cnt, e_cnt, kh_cnt),
        in_specs=[
            pl.BlockSpec((tn, tk), lambda t, e, k: (t, k)),            # x slice
            pl.BlockSpec((tn, e_cnt), lambda t, e, k: (t, 0)),         # scores
            pl.BlockSpec((None, tk, d2), lambda t, e, k: (e, k, 0)),   # w_gu[e]
            pl.BlockSpec((None, d_pad, out_pad), lambda t, e, k: (e, 0, 0)),  # w_down[e]
            pl.BlockSpec((None, 1, d2), lambda t, e, k: (e, 0, 0)),    # b_gu[e]
            pl.BlockSpec((None, 1, out_pad), lambda t, e, k: (e, 0, 0)),  # b_down[e]
        ],
        out_specs=pl.BlockSpec((tn, out_pad), lambda t, e, k: (t, 0)),
        scratch_shapes=[pltpu.VMEM((tn, d2), jnp.float32)],   # gate|up partials
    )

    # scoped-VMEM limit sized to the double-buffered block footprint (+headroom)
    in_bytes = (tn * tk * 2 + tn * e_cnt * 4 + tk * d2 * 2
                + d_pad * out_pad * 2 + d2 * 4 + out_pad * 4)
    est = 2 * in_bytes + tn * d2 * 4 + 2 * tn * out_pad * 4
    vmem_limit = int(min(64 * 1024 * 1024, max(est + (2 << 20), 16 << 20)))

    # TODO(synk): also K-tile the down projection over D (w_down blocks of
    # (tk_d, OUT)) for very large experts, and a grouped-matmul (megablocks)
    # token-sorted layout to cut FLOPs/DMA by E/num_selects.
    return pl.pallas_call(
        _moe_expert_kernel,
        out_shape=jax.ShapeDtypeStruct((n_pad, out_pad), jnp.float32),
        grid_spec=grid_spec,
        compiler_params=pltpu.CompilerParams(
            dimension_semantics=("parallel", "arbitrary", "arbitrary"),
            vmem_limit_bytes=vmem_limit),
    )(x_bf16, scores, w_gu, w_down, b_gu, b_down)


# ---------------------------------------------------------------------------
# Parameter construction (mirrors PyTorch __init__ shapes; gate|up pre-fused)
# ---------------------------------------------------------------------------
def init_params(key, input_size, hidden_features, output_size, num_experts):
    d = hidden_features // num_experts
    ks = jax.random.split(key, 6)

    def uni(k, shape, fan_in):
        bound = 1.0 / math.sqrt(fan_in)
        return jax.random.uniform(k, shape, jnp.float32, -bound, bound)

    return {
        # gate MLP: Linear(H->E, no bias) -> tanh -> Linear(E->E, no bias)
        "gate_w1_t": uni(ks[0], (input_size, num_experts), input_size),
        "gate_w2_t": uni(ks[1], (num_experts, num_experts), num_experts),
        # experts: fused gate|up  ([..., :d]=gate, [..., d:]=up), then down
        "w_gu_t":   uni(ks[2], (num_experts, input_size, 2 * d), input_size),
        "b_gu":     uni(ks[3], (num_experts, 1, 2 * d), input_size),
        "w_down_t": uni(ks[4], (num_experts, d, output_size), d),
        "b_down":   uni(ks[5], (num_experts, 1, output_size), d),
    }


# ---------------------------------------------------------------------------
# Full BaseMoELayer forward (eval mode, attention_mask=None)
# ---------------------------------------------------------------------------
def cv_squared(v, eps=1e-10):
    v = v.astype(jnp.float32)
    if v.shape[0] == 1:          # torch cv_squared special case
        return jnp.float32(0.0)
    return jnp.var(v, ddof=1) / (jnp.mean(v) ** 2 + eps)


def base_moe_layer_forward(params, x, num_selects, balance_loss_weight=0.01,
                           score_scale_factor=1.0, token_tile=512,
                           attention_mask=None):
    # TODO(synk): 2-D attention_mask gather/scatter path of BaseMoELayer.forward
    # is not implemented (only attention_mask=None is supported).
    del attention_mask
    orig_shape = x.shape[:-1]
    h = x.shape[-1]
    xt = x.reshape(-1, h).astype(jnp.float32)
    n = xt.shape[0]
    e_cnt = params["gate_w1_t"].shape[1]
    d = params["w_down_t"].shape[1]
    out_dim = params["w_down_t"].shape[2]

    # --- gate MLP + top-k routing (plain JAX: tiny, fuses) ---
    logits = jnp.tanh(xt @ params["gate_w1_t"]) @ params["gate_w2_t"]
    k_plus = min(num_selects + 1, e_cnt)
    top_vals, top_idx = jax.lax.top_k(logits, k_plus)
    topk_scores = jax.nn.softmax(top_vals[:, :num_selects].astype(jnp.float32), axis=1)
    # one-hot compare/sum instead of a scatter (scatters lower poorly on TPU)
    one_hot = (top_idx[:, :num_selects, None] ==
               jnp.arange(e_cnt)[None, None, :]).astype(jnp.float32)
    dense_scores = jnp.sum(one_hot * topk_scores[:, :, None], axis=1)   # [N, E]

    importance = dense_scores.sum(axis=0)
    load = (dense_scores > 0).sum(axis=0)
    balance_loss = balance_loss_weight * (cv_squared(importance) + cv_squared(load))

    # --- token tile: >=128, MXU-aligned, big by default, but keep >=2 tiles
    #     when possible so the "parallel" axis spans both v7x TensorCores ---
    tn = min(token_tile, _round_up(n, 128))
    tn = max(128, (tn // 128) * 128)
    while tn > 128 and -(-n // tn) < 2:
        tn = max(128, _round_up(tn // 2, 128))
    n_pad = _round_up(n, tn)
    tk = _pick_k_tile(h)

    # --- pad expert D / output dims to lane-dense multiples of 128 ---
    d_pad = _round_up(d, 128)
    out_pad = _round_up(out_dim, 128)
    w_gu, b_gu = params["w_gu_t"], params["b_gu"]
    w_down, b_down = params["w_down_t"], params["b_down"]
    if d_pad != d:
        pd = d_pad - d
        w_gu = jnp.concatenate(
            [jnp.pad(w_gu[..., :d], ((0, 0), (0, 0), (0, pd))),
             jnp.pad(w_gu[..., d:], ((0, 0), (0, 0), (0, pd)))], axis=-1)
        b_gu = jnp.concatenate(
            [jnp.pad(b_gu[..., :d], ((0, 0), (0, 0), (0, pd))),
             jnp.pad(b_gu[..., d:], ((0, 0), (0, 0), (0, pd)))], axis=-1)
        w_down = jnp.pad(w_down, ((0, 0), (0, pd), (0, 0)))
    if out_pad != out_dim:
        po = out_pad - out_dim
        w_down = jnp.pad(w_down, ((0, 0), (0, 0), (0, po)))
        b_down = jnp.pad(b_down, ((0, 0), (0, 0), (0, po)))

    pad = n_pad - n
    x_p = jnp.pad(xt, ((0, pad), (0, 0))).astype(jnp.bfloat16)
    s_p = jnp.pad(dense_scores * score_scale_factor, ((0, pad), (0, 0)))

    y = moe_experts_pallas(
        x_p, s_p,
        w_gu.astype(jnp.bfloat16), w_down.astype(jnp.bfloat16),
        b_gu, b_down, tn, tk)

    y = y[:n, :out_dim].reshape(orig_shape + (out_dim,))
    return {
        "hidden_states": y,
        "balance_loss": balance_loss,
        "num_dropped_tokens": jnp.asarray(-1.0),
        "gate_load": load,
        "gate_importance": importance,
    }


# ---------------------------------------------------------------------------
# Pure-JAX reference (same numerics: bf16 matmul inputs, fp32 accumulate)
# ---------------------------------------------------------------------------
def reference_forward(params, x, num_selects, score_scale_factor=1.0):
    h = x.shape[-1]
    xt = x.reshape(-1, h).astype(jnp.float32)
    n = xt.shape[0]
    e_cnt = params["gate_w1_t"].shape[1]
    d = params["w_down_t"].shape[1]
    out_dim = params["w_down_t"].shape[2]
    logits = jnp.tanh(xt @ params["gate_w1_t"]) @ params["gate_w2_t"]
    top_vals, top_idx = jax.lax.top_k(logits, min(num_selects + 1, e_cnt))
    scores = jax.nn.softmax(top_vals[:, :num_selects].astype(jnp.float32), axis=1)
    dense = jnp.zeros((n, e_cnt), jnp.float32).at[
        jnp.arange(n)[:, None], top_idx[:, :num_selects]].set(scores)
    dense = dense * score_scale_factor
    xb = xt.astype(jnp.bfloat16)
    y = jnp.zeros((n, out_dim), jnp.float32)
    for e in range(e_cnt):
        wg = params["w_gu_t"][e, :, :d].astype(jnp.bfloat16)
        wu = params["w_gu_t"][e, :, d:].astype(jnp.bfloat16)
        wd = params["w_down_t"][e].astype(jnp.bfloat16)
        bg = params["b_gu"][e, :, :d]
        bu = params["b_gu"][e, :, d:]
        bd = params["b_down"][e]
        g = jnp.dot(xb, wg, preferred_element_type=jnp.float32) + bg
        u = jnp.dot(xb, wu, preferred_element_type=jnp.float32) + bu
        hh = (jax.nn.silu(g) * u).astype(jnp.bfloat16)
        o = jnp.dot(hh, wd, preferred_element_type=jnp.float32) + bd
        y = y + dense[:, e:e + 1] * o
    return y.reshape(x.shape[:-1] + (out_dim,))


# ---------------------------------------------------------------------------
if __name__ == "__main__":
    B, S = 2, 8                 # batch, seq  -> N = 16 tokens
    INPUT_SIZE = 32             # input_size == output_size
    HIDDEN_FEATURES = 64        # total intermediate size across experts
    NUM_EXPERTS = 4
    NUM_SELECTS = 2

    key = jax.random.PRNGKey(0)
    kp, kx = jax.random.split(key)
    params = init_params(kp, INPUT_SIZE, HIDDEN_FEATURES, INPUT_SIZE, NUM_EXPERTS)
    x = jax.random.normal(kx, (B, S, INPUT_SIZE), jnp.float32)

    fwd = jax.jit(partial(base_moe_layer_forward, num_selects=NUM_SELECTS))
    out = fwd(params, x)
    y = jax.block_until_ready(out["hidden_states"])
    jax.block_until_ready(out["balance_loss"])

    y_ref = reference_forward(params, x, NUM_SELECTS)
    assert y.shape == (B, S, INPUT_SIZE), y.shape
    assert jnp.allclose(y, y_ref, atol=1e-2, rtol=1e-2), "mismatch vs JAX reference"

    print("KERNEL_OK")
</pallas_src>

<mosaic_0001>
module attributes {stable_mosaic.version = 11 : i64} {
  func.func @_moe_expert_kernel(%arg0: i32, %arg1: i32, %arg2: i32, %arg3: memref<128x32xbf16, #tpu.memory_space<vmem>>, %arg4: memref<128x4xf32, #tpu.memory_space<vmem>>, %arg5: memref<1x32x256xbf16, #tpu.memory_space<vmem>>, %arg6: memref<1x128x128xbf16, #tpu.memory_space<vmem>>, %arg7: memref<1x1x256xf32, #tpu.memory_space<vmem>>, %arg8: memref<1x1x128xf32, #tpu.memory_space<vmem>>, %arg9: memref<128x128xf32, #tpu.memory_space<vmem>>, %arg10: memref<128x256xf32, #tpu.memory_space<vmem>>) attributes {dimension_semantics = [#tpu.dimension_semantics<parallel>, #tpu.dimension_semantics<arbitrary>, #tpu.dimension_semantics<arbitrary>], iteration_bounds = array<i64: 1, 4, 1>, scalar_prefetch = 0 : i64, scratch_operands = 1 : i64, tpu.core_type = #tpu.core_type<tc>, window_params = [{transform_indices = @transform_0, window_bounds = array<i64: 128, 32>}, {transform_indices = @transform_1, window_bounds = array<i64: 128, 4>}, {transform_indices = @transform_2, window_bounds = array<i64: 1, 32, 256>}, {transform_indices = @transform_3, window_bounds = array<i64: 1, 128, 128>}, {transform_indices = @transform_4, window_bounds = array<i64: 1, 1, 256>}, {transform_indices = @transform_5, window_bounds = array<i64: 1, 1, 128>}, {transform_indices = @transform_6, window_bounds = array<i64: 128, 128>}]} {
    %c0_i32 = arith.constant 0 : i32
    %0 = arith.cmpi eq, %arg1, %c0_i32 : i32
    %c0_i32_0 = arith.constant 0 : i32
    %1 = arith.cmpi eq, %arg2, %c0_i32_0 : i32
    %2 = arith.andi %0, %1 : i1
    %3 = arith.extui %2 : i1 to i32
    %c0_i32_1 = arith.constant 0 : i32
    %4 = arith.cmpi ne, %3, %c0_i32_1 : i32
    scf.if %4 {
      %cst_14 = arith.constant 0.000000e+00 : f32
      %18 = vector.broadcast %cst_14 : f32 to vector<128x128xf32>
      %c0_15 = arith.constant 0 : index
      %c0_16 = arith.constant 0 : index
      %19 = vector.load %arg9[%c0_15, %c0_16] : memref<128x128xf32, #tpu.memory_space<vmem>>, vector<128x128xf32>
      tpu.vector_store %arg9[%c0_15, %c0_16], %18 {strides = array<i32>} : memref<128x128xf32, #tpu.memory_space<vmem>>, vector<128x128xf32>,
    } else {
    }
    %c0_i32_2 = arith.constant 0 : i32
    %5 = arith.cmpi eq, %arg2, %c0_i32_2 : i32
    %6 = arith.extui %5 : i1 to i32
    %c0_i32_3 = arith.constant 0 : i32
    %7 = arith.cmpi ne, %6, %c0_i32_3 : i32
    scf.if %7 {
      %cst_14 = arith.constant 0.000000e+00 : f32
      %18 = vector.broadcast %cst_14 : f32 to vector<128x256xf32>
      %c0_15 = arith.constant 0 : index
      %c0_16 = arith.constant 0 : index
      %19 = vector.load %arg10[%c0_15, %c0_16] : memref<128x256xf32, #tpu.memory_space<vmem>>, vector<128x256xf32>
      tpu.vector_store %arg10[%c0_15, %c0_16], %18 {strides = array<i32>} : memref<128x256xf32, #tpu.memory_space<vmem>>, vector<128x256xf32>,
    } else {
    }
    %c0 = arith.constant 0 : index
    %c0_4 = arith.constant 0 : index
    %8 = vector.load %arg10[%c0, %c0_4] : memref<128x256xf32, #tpu.memory_space<vmem>>, vector<128x256xf32>
    %c0_5 = arith.constant 0 : index
    %c0_6 = arith.constant 0 : index
    %9 = vector.load %arg3[%c0_5, %c0_6] : memref<128x32xbf16, #tpu.memory_space<vmem>>, vector<128x32xbf16>
    %c0_7 = arith.constant 0 : index
    %c0_8 = arith.constant 0 : index
    %c0_9 = arith.constant 0 : index
    %10 = vector.load %arg5[%c0_7, %c0_8, %c0_9] : memref<1x32x256xbf16, #tpu.memory_space<vmem>>, vector<1x32x256xbf16>
    %11 = vector.shape_cast %10 : vector<1x32x256xbf16> to vector<32x256xbf16>
    %cst = arith.constant dense<0.000000e+00> : vector<128x256xf32>
    %12 = tpu.matmul %9, %11, %cst {dimension_numbers = #tpu.dot_dimension_numbers<[1], [0], [0], [1], [0, 0, 1, 1], [], []>} : vector<128x32xbf16>, vector<32x256xbf16>, vector<128x256xf32> -> vector<128x256xf32>
    %13 = arith.addf %8, %12 : vector<128x256xf32>
    %c0_10 = arith.constant 0 : index
    %c0_11 = arith.constant 0 : index
    %14 = vector.load %arg10[%c0_10, %c0_11] : memref<128x256xf32, #tpu.memory_space<vmem>>, vector<128x256xf32>
    tpu.vector_store %arg10[%c0_10, %c0_11], %13 {strides = array<i32>} : memref<128x256xf32, #tpu.memory_space<vmem>>, vector<128x256xf32>,
    %c0_i32_12 = arith.constant 0 : i32
    %15 = arith.cmpi eq, %arg2, %c0_i32_12 : i32
    %16 = arith.extui %15 : i1 to i32
    %c0_i32_13 = arith.constant 0 : i32
    %17 = arith.cmpi ne, %16, %c0_i32_13 : i32
    scf.if %17 {
      %c0_14 = arith.constant 0 : index
      %c0_15 = arith.constant 0 : index
      %18 = vector.load %arg10[%c0_14, %c0_15] : memref<128x256xf32, #tpu.memory_space<vmem>>, vector<128x256xf32>
      %c0_16 = arith.constant 0 : index
      %c0_17 = arith.constant 0 : index
      %c0_18 = arith.constant 0 : index
      %19 = vector.load %arg7[%c0_16, %c0_17, %c0_18] : memref<1x1x256xf32, #tpu.memory_space<vmem>>, vector<1x1x256xf32>
      %20 = vector.shape_cast %19 : vector<1x1x256xf32> to vector<1x256xf32>
      %21 = vector.broadcast %20 : vector<1x256xf32> to vector<128x256xf32>
      %22 = arith.addf %18, %21 : vector<128x256xf32>
      %23 = vector.extract_strided_slice %22 {offsets = [0, 0], sizes = [128, 128], strides = [1, 1]} : vector<128x256xf32> to vector<128x128xf32>
      %24 = vector.extract_strided_slice %22 {offsets = [0, 128], sizes = [128, 128], strides = [1, 1]} : vector<128x256xf32> to vector<128x128xf32>
      %25 = arith.negf %23 : vector<128x128xf32>
      %26 = math.exp %25 : vector<128x128xf32>
      %cst_19 = arith.constant 1.000000e+00 : f32
      %27 = vector.broadcast %cst_19 : f32 to vector<128x128xf32>
      %28 = arith.addf %27, %26 : vector<128x128xf32>
      %29 = arith.divf %27, %28 : vector<128x128xf32>
      %30 = arith.mulf %23, %29 : vector<128x128xf32>
      %31 = arith.mulf %30, %24 : vector<128x128xf32>
      %32 = arith.truncf %31 : vector<128x128xf32> to vector<128x128xbf16>
      %c0_20 = arith.constant 0 : index
      %c0_21 = arith.constant 0 : index
      %c0_22 = arith.constant 0 : index
      %33 = vector.load %arg6[%c0_20, %c0_21, %c0_22] : memref<1x128x128xbf16, #tpu.memory_space<vmem>>, vector<1x128x128xbf16>
      %34 = vector.shape_cast %33 : vector<1x128x128xbf16> to vector<128x128xbf16>
      %cst_23 = arith.constant dense<0.000000e+00> : vector<128x128xf32>
      %35 = tpu.matmul %32, %34, %cst_23 {dimension_numbers = #tpu.dot_dimension_numbers<[1], [0], [0], [1], [0, 0, 1, 1], [], []>} : vector<128x128xbf16>, vector<128x128xbf16>, vector<128x128xf32> -> vector<128x128xf32>
      %c0_24 = arith.constant 0 : index
      %c0_25 = arith.constant 0 : index
      %c0_26 = arith.constant 0 : index
      %36 = vector.load %arg8[%c0_24, %c0_25, %c0_26] : memref<1x1x128xf32, #tpu.memory_space<vmem>>, vector<1x1x128xf32>
      %37 = vector.shape_cast %36 : vector<1x1x128xf32> to vector<1x128xf32>
      %38 = vector.broadcast %37 : vector<1x128xf32> to vector<128x128xf32>
      %39 = arith.addf %35, %38 : vector<128x128xf32>
      %40 = tpu.iota {dimensions = array<i32: 1>} : vector<128x4xi32>
      %41 = vector.broadcast %arg1 : i32 to vector<128x4xi32>
      %42 = arith.cmpi eq, %40, %41 : vector<128x4xi32>
      %c0_27 = arith.constant 0 : index
      %c0_28 = arith.constant 0 : index
      %43 = vector.load %arg4[%c0_27, %c0_28] : memref<128x4xf32, #tpu.memory_space<vmem>>, vector<128x4xf32>
      %cst_29 = arith.constant 0.000000e+00 : f32
      %44 = vector.broadcast %cst_29 : f32 to vector<128x4xf32>
      %45 = arith.select %42, %43, %44 : vector<128x4xi1>, vector<128x4xf32>
      %cst_30 = arith.constant dense<0.000000e+00> : vector<128xf32>
      %46 = vector.multi_reduction <add>, %45, %cst_30 [1] : vector<128x4xf32> to vector<128xf32>
      %47 = vector.shape_cast %46 : vector<128xf32> to vector<128x1xf32>
      %c0_31 = arith.constant 0 : index
      %c0_32 = arith.constant 0 : index
      %48 = vector.load %arg9[%c0_31, %c0_32] : memref<128x128xf32, #tpu.memory_space<vmem>>, vector<128x128xf32>
      %49 = vector.broadcast %47 : vector<128x1xf32> to vector<128x128xf32>
      %50 = arith.mulf %49, %39 : vector<128x128xf32>
      %51 = arith.addf %48, %50 : vector<128x128xf32>
      %c0_33 = arith.constant 0 : index
      %c0_34 = arith.constant 0 : index
      %52 = vector.load %arg9[%c0_33, %c0_34] : memref<128x128xf32, #tpu.memory_space<vmem>>, vector<128x128xf32>
      tpu.vector_store %arg9[%c0_33, %c0_34], %51 {strides = array<i32>} : memref<128x128xf32, #tpu.memory_space<vmem>>, vector<128x128xf32>,
    } else {
    }
    return
  }
  func.func @transform_0(%arg0: i32, %arg1: i32, %arg2: i32) -> (i32, i32) {
    %c0_i32 = arith.constant 0 : i32
    return %arg0, %arg2 : i32, i32
  }
  func.func @transform_1(%arg0: i32, %arg1: i32, %arg2: i32) -> (i32, i32) {
    %c0_i32 = arith.constant 0 : i32
    %c0_i32_0 = arith.constant 0 : i32
    return %arg0, %c0_i32 : i32, i32
  }
  func.func @transform_2(%arg0: i32, %arg1: i32, %arg2: i32) -> (i32, i32, i32) {
    %c0_i32 = arith.constant 0 : i32
    %c0_i32_0 = arith.constant 0 : i32
    return %arg1, %arg2, %c0_i32 : i32, i32, i32
  }
  func.func @transform_3(%arg0: i32, %arg1: i32, %arg2: i32) -> (i32, i32, i32) {
    %c0_i32 = arith.constant 0 : i32
    %c0_i32_0 = arith.constant 0 : i32
    %c0_i32_1 = arith.constant 0 : i32
    return %arg1, %c0_i32, %c0_i32_0 : i32, i32, i32
  }
  func.func @transform_4(%arg0: i32, %arg1: i32, %arg2: i32) -> (i32, i32, i32) {
    %c0_i32 = arith.constant 0 : i32
    %c0_i32_0 = arith.constant 0 : i32
    %c0_i32_1 = arith.constant 0 : i32
    return %arg1, %c0_i32, %c0_i32_0 : i32, i32, i32
  }
  func.func @transform_5(%arg0: i32, %arg1: i32, %arg2: i32) -> (i32, i32, i32) {
    %c0_i32 = arith.constant 0 : i32
    %c0_i32_0 = arith.constant 0 : i32
    %c0_i32_1 = arith.constant 0 : i32
    return %arg1, %c0_i32, %c0_i32_0 : i32, i32, i32
  }
  func.func @transform_6(%arg0: i32, %arg1: i32, %arg2: i32) -> (i32, i32) {
    %c0_i32 = arith.constant 0 : i32
    %c0_i32_0 = arith.constant 0 : i32
    return %arg0, %c0_i32 : i32, i32
  }
}

</mosaic_0001>

<bundles_post_ra>
// kernel: base_moe_layer_forward.1
= control target key start
LH: loop header
LB: loop body
LE: loop exit
PB: predicated region body
PF: predicated region fallthrough
CT: control target
= control target key end

     0   :  { %s1886_s21 = smov 0   ;;  %s1888_s22 = smov 0   ;;  %s2501_s0 = inlined_call_operand.vmem [shape: bf16[128,32], index: 0, kind: input, shape index: {}]   ;;  %s2502_s1 = inlined_call_operand.vmem [shape: f32[128,4], index: 1, kind: input, shape index: {}]   ;;  %s2503_s2 = inlined_call_operand.vmem [shape: bf16[4,32,256], index: 2, kind: input, shape index: {}]   ;;  %s2504_s3 = inlined_call_operand.vmem [shape: bf16[4,128,128], index: 3, kind: input, shape index: {}]   ;;  %s2505_s4 = inlined_call_operand.vmem [shape: f32[4,1,256], index: 4, kind: input, shape index: {}]   ;;  %s2506_s5 = inlined_call_operand.vmem [shape: f32[4,1,128], index: 5, kind: input, shape index: {}]   ;;  %s2507_s6 = inlined_call_operand.vmem [shape: f32[128,128], index: 6, kind: output, shape index: {}]  }
   0x1   :  { %s1890_s23 = smov 0  }
   0x2 LB: > { %s31_s24 = sadd.s32 1, %s1844_s22  ;;  %p1582_p0 = scmp.ge.s32.totalorder %s1848_s23, 1  ;;  %s1848_s23 = sphi %s1890_s23, %s16_s23   ;;  %s1844_s22 = sphi %s1888_s22, %s2527_s22   ;;  %s1840_s21 = sphi %s1886_s21, %s2526_s21  }
   0x3   : > { %p33_p1 = scmp.ge.s32.totalorder %s31_s24, 4  ;;  %p293_p2 = scmp.lt.s32.totalorder %s1848_s23, 5 }
   0x5   : > { %s2529_s24 = smov (%p33_p1, %s31_s24), 0  ;;  %p294_p3 = pnand %p1582_p0, %p293_p2 }
   0x6   : > { %p369_p4 = scmp.lt.s32.totalorder (!%p294_p3), %s1840_s21, 3  ;;  %p398_p5 = scmp.eq.s32.totalorder (!%p294_p3), %s1840_s21, 0 }
   0x7   : > { %297 = sbr.rel (%p294_p3) target bundleno = 468 (0x1d4), region = 44 }
   0xc   : > { %s1909_s25 = scalar_select %p369_p4, %s1840_s21, 3  ;;  %v1850_v0 = vmov (%p398_p5), 0.0  }
   0xd   : > { %403 = sbr.rel (!%p398_p5) target bundleno = 29 (0x1d), region = 48  ;;  %404 = vst [vmem:[%s2507_s6] sm:$0xff] (%p398_p5), %v1850_v0 }
   0xe   : > { %s1705_s26 = sshll.u32 %s1909_s25, 5  ;;  %s1706_s27 = sshll.u32 %s1909_s25, 6  ;;  %405 = vst [vmem:[%s2507_s6 + $0x8] sm:$0xff] (%p398_p5), %v1850_v0 }
   0xf   : > { %s1916_s30 = scalar_lea.vmem %s2503_s2, %s1705_s26  ;;  %s1921_s9 = scalar_lea.vmem %s2504_s3, %s1706_s27  ;;  %406 = vst [vmem:[%s2507_s6 + $0x10] sm:$0xff] (%p398_p5), %v1850_v0 }
  0x10   : > { %s1587_s10 = sshll.u32 %s1909_s25, 1  ;;  %s390_s13 = scalar_lea.vmem %s2506_s5, %s1909_s25  ;;  %407 = vst [vmem:[%s2507_s6 + $0x18] sm:$0xff] (%p398_p5), %v1850_v0 }
  0x11   : > { %s1931_s16 = scalar_lea.vmem %s2505_s4, %s1587_s10  ;;  %408 = vst [vmem:[%s2507_s6 + $0x20] sm:$0xff] (%p398_p5), %v1850_v0 }
  0x12   : > { %409 = vst [vmem:[%s2507_s6 + $0x28] sm:$0xff] %v1850_v0 }
  0x13   : > { %410 = vst [vmem:[%s2507_s6 + $0x30] sm:$0xff] %v1850_v0 }
  0x14   : > { %411 = vst [vmem:[%s2507_s6 + $0x38] sm:$0xff] %v1850_v0 }
  0x15   : > { %412 = vst [vmem:[%s2507_s6 + $0x40] sm:$0xff] %v1850_v0 }
  0x16   : > { %413 = vst [vmem:[%s2507_s6 + $0x48] sm:$0xff] %v1850_v0 }
  0x17   : > { %414 = vst [vmem:[%s2507_s6 + $0x50] sm:$0xff] %v1850_v0 }
  0x18   : > { %415 = vst [vmem:[%s2507_s6 + $0x58] sm:$0xff] %v1850_v0 }
  0x19   : > { %416 = vst [vmem:[%s2507_s6 + $0x60] sm:$0xff] %v1850_v0 }
  0x1a   : > { %417 = vst [vmem:[%s2507_s6 + $0x68] sm:$0xff] %v1850_v0 }
  0x1b   : > { %418 = vst [vmem:[%s2507_s6 + $0x70] sm:$0xff] %v1850_v0 }
  0x1c   : > { %419 = vst [vmem:[%s2507_s6 + $0x78] sm:$0xff] %v1850_v0 }
  0x1d PF: > { %v1631_v1 = vld [vmem:[%s1916_s30 + $0x10] sm:$0xf]  ;;  %v1719_v2 = vld [vmem:[%s1916_s30 + $0x14] sm:$0xf0]  ;;  %v1623_v3 = vld [vmem:[%s1916_s30] sm:$0xf]  ;;  %v1288_v53 = vlaneseq  ;;  %v1290_v62 = vstv %s1840_s21 }
  0x1e   : > { %v1632_v4 = vor.u32 %v1719_v2, %v1631_v1  ;;  %v1717_v5 = vld [vmem:[%s1916_s30 + $0x4] sm:$0xf0]  ;;  %v1718_v6 = vld [vmem:[%s1916_s30 + $0x14] sm:$0xf]  ;;  %v1633_v7 = vld [vmem:[%s1916_s30 + $0x18] sm:$0xf0] }
  0x1f   : > { %v1716_v8 = vld [vmem:[%s1916_s30 + $0x4] sm:$0xf]  ;;  %v1624_v9 = vor.u32 %v1717_v5, %v1623_v3  ;;  %v1636_v10 = vor.u32 %v1718_v6, %v1633_v7  ;;  %v1625_v11 = vld [vmem:[%s1916_s30 + $0x8] sm:$0xf0]  ;;  %vm567_vm0 = vcmask 261120   ;;  %v1710_v15 = vld [vmem:[%s2501_s0 + $0x10] sm:$0xff] }
  0x20   : > { %598 = vmatpush.bf16.msra.mxu0 %v1632_v4  ;;  %v1628_v12 = vor.u32 %v1716_v8, %v1625_v11  ;;  %v1708_v13 = vld [vmem:[%s2501_s0] sm:$0xff]  ;;  %v1709_v14 = vld [vmem:[%s2501_s0 + $0x8] sm:$0xff]  ;;  %v1711_v16 = vld [vmem:[%s2501_s0 + $0x18] sm:$0xff]  ;;  %v1289_v58 = vand.u32 127, %v1288_v53  ;;  %vm1324_vm5 = vcmask 31744  }
  0x21   : > { %647 = vmatpush.bf16.msra.mxu1 %v1636_v10  ;;  %v1712_v17 = vld [vmem:[%s2501_s0 + $0x20] sm:$0xff]  ;;  %v1713_v18 = vld [vmem:[%s2501_s0 + $0x28] sm:$0xff]  ;;  %v1714_v19 = vld [vmem:[%s2501_s0 + $0x30] sm:$0xff] }
  0x22   : > { %v1727_v20 = vld [vmem:[%s1921_s9 + $0x38] sm:$0xff]  ;;  %v1726_v22 = vld [vmem:[%s1921_s9 + $0x30] sm:$0xff]  ;;  %v1725_v23 = vld [vmem:[%s1921_s9 + $0x28] sm:$0xff]  ;;  %vm2079_vm4 = vcmp.eq.s32.totalorder %v1289_v58, %v1290_v62 }
  0x23   : > { %1239 = vmatpush.bf16.msra.mxu2 %v1727_v20  ;;  %1728 = vmatpush.bf16.msra.mxu3 %v1727_v20  ;;  %v1715_v21 = vld [vmem:[%s2501_s0 + $0x38] sm:$0xff]  ;;  %v1724_v24 = vld [vmem:[%s1921_s9 + $0x20] sm:$0xff]  ;;  %v1722_v30 = vld [vmem:[%s1921_s9 + $0x10] sm:$0xff] }
  0x24   : > { %599 = vmatpush.bf16.msra.mxu0 %v1624_v9  ;;  %v789_v25 = vld [vmem:[%s1931_s16] sm:$0x3]  ;;  %v1723_v27 = vld [vmem:[%s1921_s9 + $0x18] sm:$0xff]  ;;  %v1721_v33 = vld [vmem:[%s1921_s9 + $0x8] sm:$0xff] }
  0x25   : > { %648 = vmatpush.bf16.msra.mxu1 %v1628_v12  ;;  %v2034_v26 = vperm.slane %v789_v25, 0  ;;  %v1720_v36 = vld [vmem:[%s1921_s9] sm:$0xff]  ;;  %v2075_v3 = vperm.slane %v789_v25, 1 }
  0x26   : > { %v1292_v1 = vld [vmem:[%s2502_s1] sm:$0xff] }
  0x27   : > { %1637 = vmatmul.msk.bf16.vlgmr.msra.gmra.mxu0 %vm567_vm0, %v1708_v13  ;;  %1240 = vmatpush.bf16.msra.mxu2 %v1726_v22  ;;  %v1308_v11 = vsel %vm2079_vm4, %v1292_v1, 0.0 }
  0x28   : > { %1645 = vmatmul.msk.bf16.vlgmr.msra.gmra.mxu1 %vm567_vm0, %v1708_v13  ;;  %1729 = vmatpush.bf16.msra.mxu3 %v1726_v22 }
  0x2b   : > { %1241 = vmatpush.bf16.msra.mxu2 %v1725_v23 }
  0x2c   : > { %1730 = vmatpush.bf16.msra.mxu3 %v1725_v23 }
  0x2f   : > { %1242 = vmatpush.bf16.msra.mxu2 %v1724_v24 }
  0x30   : > { %1731 = vmatpush.bf16.msra.mxu3 %v1724_v24 }
  0x33   : > { %1243 = vmatpush.bf16.msra.mxu2 %v1723_v27 }
  0x34   : > { %1732 = vmatpush.bf16.msra.mxu3 %v1723_v27  ;;  %v1293_v27 = vld [vmem:[%s2502_s1 + $0x8] sm:$0xff] }
  0x37   : > { %1638 = vmatmul.msk.bf16.gmra.mxu0 %vm567_vm0, %v1709_v14  ;;  %1244 = vmatpush.bf16.msra.mxu2 %v1722_v30 }
  0x38   : > { %1646 = vmatmul.msk.bf16.gmra.mxu1 %vm567_vm0, %v1709_v14  ;;  %1733 = vmatpush.bf16.msra.mxu3 %v1722_v30 }
  0x3b   : > { %1245 = vmatpush.bf16.msra.mxu2 %v1721_v33 }
  0x3c   : > { %1734 = vmatpush.bf16.msra.mxu3 %v1721_v33 }
  0x3f   : > { %1246 = vmatpush.bf16.msra.mxu2 %v1720_v36 }
  0x40   : > { %1735 = vmatpush.bf16.msra.mxu3 %v1720_v36 }
  0x47   : > { %1639 = vmatmul.msk.bf16.gmra.mxu0 %vm567_vm0, %v1710_v15 }
  0x48   : > { %1647 = vmatmul.msk.bf16.gmra.mxu1 %vm567_vm0, %v1710_v15  ;;  %v1325_v15 = vsel %vm1324_vm5, %v1308_v11, 0.0 }
  0x49   : > { %1326 = vadd.xlane.f32.xlu0 %v1325_v15 }
  0x57   : > { %1640 = vmatmul.msk.bf16.gmra.mxu0 %vm567_vm0, %v1711_v16 }
  0x58   : > { %1648 = vmatmul.msk.bf16.gmra.mxu1 %vm567_vm0, %v1711_v16 }
  0x67   : > { %1641 = vmatmul.msk.bf16.gmra.mxu0 %vm567_vm0, %v1712_v17 }
  0x68   : > { %1649 = vmatmul.msk.bf16.gmra.mxu1 %vm567_vm0, %v1712_v17 }
  0x77   : > { %1642 = vmatmul.msk.bf16.gmra.mxu0 %vm567_vm0, %v1713_v18 }
  0x78   : > { %1650 = vmatmul.msk.bf16.gmra.mxu1 %vm567_vm0, %v1713_v18 }
  0x87   : > { %1643 = vmatmul.msk.bf16.gmra.mxu0 %vm567_vm0, %v1714_v19 }
  0x88   : > { %1651 = vmatmul.msk.bf16.gmra.mxu1 %vm567_vm0, %v1714_v19 }
  0x97   : > { %1644 = vmatmul.msk.bf16.gmra.mxu0 %vm567_vm0, %v1715_v21 }
  0x98   : > { %1652 = vmatmul.msk.bf16.gmra.mxu1 %vm567_vm0, %v1715_v21 }
  0xa4   : > { %v601_v28 = vpop.f32.mrf.mxu0 }
  0xa5   : > { %v2038_v29 = vadd.f32 %v2034_v26, %v601_v28  ;;  %v2041_v31 = vpop.f32.mrf.mxu1 }
  0xa6   : > { %v796_v21 = vadd.f32 %v2075_v3, %v2041_v31 }
  0xa7   : > { %v1653_v32 = vmul.f32 -1.442695, %v2038_v29 }
  0xa9   : > { %1762 = vpow2.f32 %v1653_v32 }
  0xac   : > { %v603_v34 = vpop.f32.mrf.mxu0 }
  0xad   : > { %v2046_v35 = vadd.f32 %v2034_v26, %v603_v34  ;;  %v2049_v37 = vpop.f32.mrf.mxu1 }
  0xae   : > { %v798_v31 = vadd.f32 %v2075_v3, %v2049_v37 }
  0xaf   : > { %v1763_v38 = vpop.eup %1762  ;;  %v1654_v39 = vmul.f32 -1.442695, %v2046_v35 }
  0xb0   : > { %v875_v40 = vadd.f32 1.0, %v1763_v38 }
  0xb1   : > { %1764 = vpow2.f32 %v1654_v39 }
  0xb2   : > { %1766 = vrcp.f32 %v875_v40  ;;  %v902_v54 = vand.u32 2147483648, %v875_v40  ;;  %vm896_vm2 = vweird.f32 %v875_v40  ;;  %v900_v63 = vand.u32 2147483647, %v875_v40 }
  0xb4   : > { %v606_v41 = vpop.f32.mrf.mxu0  ;;  %v903_v5 = vor.u32 1.1754944e-38, %v902_v54  ;;  %vm901_vm6 = vcmp.eq.f32.partialorder %v900_v63, 8.507059e+37 }
  0xb5   : > { %v2053_v42 = vadd.f32 %v2034_v26, %v606_v41  ;;  %v2055_v43 = vpop.f32.mrf.mxu1 }
  0xb7   : > { %v1765_v44 = vpop.eup %1764  ;;  %v1655_v45 = vmul.f32 -1.442695, %v2053_v42 }
  0xb8   : > { %v1767_v46 = vpop.eup %1766  ;;  %v876_v47 = vadd.f32 1.0, %v1765_v44 }
  0xb9   : > { %v892_v48 = vmul.f32 %v1767_v46, %v875_v40  ;;  %1768 = vpow2.f32 %v1655_v45  ;;  %vm897_vm1 = vweird.f32 %v1767_v46 }
  0xba   : > { %1770 = vrcp.f32 %v876_v47  ;;  %vm2070_vm3 = vmor %vm896_vm2, %vm897_vm1  ;;  %v915_v8 = vand.u32 2147483647, %v876_v47  ;;  %v917_v9 = vand.u32 2147483648, %v876_v47  ;;  %vm911_vm8 = vweird.f32 %v876_v47 }
  0xbb   : > { %v893_v49 = vsub.f32 1.0, %v892_v48 }
  0xbc   : > { %v608_v50 = vpop.f32.mrf.mxu0  ;;  %vm916_vm10 = vcmp.eq.f32.partialorder %v915_v8, 8.507059e+37  ;;  %v918_v20 = vor.u32 1.1754944e-38, %v917_v9 }
  0xbd   : > { %v894_v51 = vmul.f32 %v1767_v46, %v893_v49  ;;  %v2059_v52 = vadd.f32 %v2034_v26, %v608_v50  ;;  %v2064_v61 = vpop.f32.mrf.mxu1 }
  0xbf   : > { %v1769_v55 = vpop.eup %1768  ;;  %v895_v56 = vadd.f32 %v1767_v46, %v894_v51  ;;  %v1656_v57 = vmul.f32 -1.442695, %v2059_v52  ;;  %v1294_v51 = vld [vmem:[%s2502_s1 + $0x10] sm:$0xff] }
  0xc0   : > { %v1771_v59 = vpop.eup %1770  ;;  %v2062_v60 = vadd.f32 1.0, %v1769_v55 }
  0xc1   : > { %v907_v0 = vmul.f32 %v1771_v59, %v876_v47  ;;  %1772 = vpow2.f32 %v1656_v57  ;;  %v899_v4 = vsel %vm2070_vm3, %v1767_v46, %v895_v56  ;;  %vm912_vm7 = vweird.f32 %v1771_v59 }
  0xc2   : > { %1774 = vrcp.f32 %v2062_v60  ;;  %v904_v14 = vsel %vm901_vm6, %v903_v5, %v899_v4  ;;  %vm913_vm9 = vmor %vm911_vm8, %vm912_vm7  ;;  %v932_v47 = vand.u32 2147483648, %v2062_v60  ;;  %vm926_vm12 = vweird.f32 %v2062_v60 }
  0xc3   : > { %v908_v6 = vsub.f32 1.0, %v907_v0  ;;  %v1131_v23 = vmul.f32 %v904_v14, %v2038_v29  ;;  %v1309_v29 = vsel %vm2079_vm4, %v1293_v27, 0.0  ;;  %v930_v49 = vand.u32 2147483647, %v2062_v60 }
  0xc4   : > { %v611_v10 = vpop.f32.mrf.mxu0  ;;  %v1328_v36 = vsel %vm1324_vm5, %v1309_v29, 0.0  ;;  %v1310_v56 = vsel %vm2079_vm4, %v1294_v51, 0.0  ;;  %v933_v57 = vor.u32 1.1754944e-38, %v932_v47 }
  0xc5   : > { %v909_v12 = vmul.f32 %v1771_v59, %v908_v6  ;;  %v2086_v13 = vadd.f32 %v2034_v26, %v611_v10  ;;  %v2097_v30 = vpop.f32.mrf.mxu1  ;;  %v1147_v39 = vmul.f32 %v1131_v23, %v796_v21  ;;  %1329 = vadd.xlane.f32.xlu0 %v1328_v36  ;;  %v1331_v63 = vsel %vm1324_vm5, %v1310_v56, 0.0 }
  0xc6   : > { %vm931_vm14 = vcmp.eq.f32.partialorder %v930_v49, 8.507059e+37  ;;  %1332 = vadd.xlane.f32.xlu1 %v1331_v63  ;;  %v800_v10 = vadd.f32 %v2075_v3, %v2055_v43 }
  0xc7   : > { %v1773_v16 = vpop.eup %1772  ;;  %v910_v17 = vadd.f32 %v1771_v59, %v909_v12  ;;  %v1657_v18 = vmul.f32 -1.442695, %v2086_v13 }
  0xc8   : > { %v1775_v19 = vpop.eup %1774  ;;  %v878_v22 = vadd.f32 1.0, %v1773_v16  ;;  %v1295_v16 = vld [vmem:[%s2502_s1 + $0x18] sm:$0xff] }
  0xc9   : > { %v914_v24 = vsel %vm913_vm9, %v1771_v59, %v910_v17  ;;  %v922_v25 = vmul.f32 %v1775_v19, %v2062_v60  ;;  %1776 = vpow2.f32 %v1657_v18  ;;  %vm927_vm11 = vweird.f32 %v1775_v19 }
  0xca   : > { %v919_v28 = vsel %vm916_vm10, %v918_v20, %v914_v24  ;;  %1778 = vrcp.f32 %v878_v22  ;;  %vm2117_vm13 = vmor %vm926_vm12, %vm927_vm11  ;;  %v945_v58 = vand.u32 2147483647, %v878_v22  ;;  %v947_v59 = vand.u32 2147483648, %v878_v22 }
  0xcb   : > { %v1132_v32 = vmul.f32 %v919_v28, %v2046_v35  ;;  %v923_v33 = vsub.f32 1.0, %v922_v25  ;;  %vm941_vm0 = vweird.f32 %v878_v22  ;;  %v802_v20 = vadd.f32 %v2075_v3, %v2064_v61 }
  0xcc   : > { %v613_v34 = vpop.f32.mrf.mxu0  ;;  %vm946_vm2 = vcmp.eq.f32.partialorder %v945_v58, 8.507059e+37  ;;  %v948_v9 = vor.u32 1.1754944e-38, %v947_v59  ;;  %v1311_v43 = vsel %vm2079_vm4, %v1295_v16, 0.0  ;;  %v804_v58 = vadd.f32 %v2075_v3, %v2097_v30 }
  0xcd   : > { %v924_v38 = vmul.f32 %v1775_v19, %v923_v33  ;;  %v1148_v40 = vmul.f32 %v1132_v32, %v798_v31  ;;  %v2106_v41 = vadd.f32 %v2034_v26, %v613_v34  ;;  %v2126_v62 = vpop.f32.mrf.mxu1  ;;  %v1334_v21 = vsel %vm1324_vm5, %v1311_v43, 0.0 }
  0xce   : > { %1335 = vadd.xlane.f32.xlu1 %v1334_v21  ;;  %v806_v30 = vadd.f32 %v2075_v3, %v2126_v62  ;;  %v1298_v21 = vld [vmem:[%s2502_s1 + $0x30] sm:$0xff] }
  0xcf   : > { %v1777_v44 = vpop.eup %1776  ;;  %v925_v45 = vadd.f32 %v1775_v19, %v924_v38  ;;  %v1658_v35 = vmul.f32 -1.442695, %v2106_v41  ;;  %v1163_v46 = vpack.c.bf16 %v1148_v40, %v1147_v39  ;;  %v1296_v38 = vld [vmem:[%s2502_s1 + $0x20] sm:$0xff] }
  0xd0   : > { %v1779_v37 = vpop.eup %1778  ;;  %v2110_v48 = vadd.f32 1.0, %v1777_v44 }
  0xd1   : > { %v937_v50 = vmul.f32 %v1779_v37, %v878_v22  ;;  %1780 = vpow2.f32 %v1658_v35  ;;  %1247 = vmatmul.bf16.vlgmr.msra.gmra.mxu2 %v1163_v46  ;;  %v929_v54 = vsel %vm2117_vm13, %v1775_v19, %v925_v45  ;;  %vm942_vm15 = vweird.f32 %v1779_v37 }
  0xd2   : > { %1782 = vrcp.f32 %v2110_v48  ;;  %v934_v2 = vsel %vm931_vm14, %v933_v57, %v929_v54  ;;  %vm943_vm1 = vmor %vm941_vm0, %vm942_vm15  ;;  %v962_v31 = vand.u32 2147483648, %v2110_v48  ;;  %vm956_vm6 = vweird.f32 %v2110_v48 }
  0xd3   : > { %v938_v55 = vsub.f32 1.0, %v937_v50  ;;  %v1133_v12 = vmul.f32 %v934_v2, %v2053_v42  ;;  %v960_v34 = vand.u32 2147483647, %v2110_v48  ;;  %v1312_v45 = vsel %vm2079_vm4, %v1296_v38, 0.0 }
  0xd4   : > { %v616_v60 = vpop.f32.mrf.mxu0  ;;  %v963_v35 = vor.u32 1.1754944e-38, %v962_v31 }
  0xd5   : > { %v939_v0 = vmul.f32 %v1779_v37, %v938_v55  ;;  %v2130_v1 = vadd.f32 %v2034_v26, %v616_v60  ;;  %v1149_v23 = vmul.f32 %v1133_v12, %v800_v10  ;;  %v2149_v27 = vpop.f32.mrf.mxu1  ;;  %vm961_vm8 = vcmp.eq.f32.partialorder %v960_v34, 8.507059e+37 }
  0xd7   : > { %v1781_v4 = vpop.eup %1780  ;;  %v940_v5 = vadd.f32 %v1779_v37, %v939_v0  ;;  %v1659_v6 = vmul.f32 -1.442695, %v2130_v1 }
  0xd8   : > { %v1783_v8 = vpop.eup %1782  ;;  %v880_v11 = vadd.f32 1.0, %v1781_v4  ;;  %v1297_v4 = vld [vmem:[%s2502_s1 + $0x28] sm:$0xff] }
  0xd9   : > { %v944_v14 = vsel %vm943_vm1, %v1779_v37, %v940_v5  ;;  %v952_v15 = vmul.f32 %v1783_v8, %v2110_v48  ;;  %1784 = vpow2.f32 %v1659_v6  ;;  %vm957_vm3 = vweird.f32 %v1783_v8 }
  0xda   : > { %v949_v17 = vsel %vm946_vm2, %v948_v9, %v944_v14  ;;  %1786 = vrcp.f32 %v880_v11  ;;  %vm2160_vm7 = vmor %vm956_vm6, %vm957_vm3  ;;  %v975_v46 = vand.u32 2147483647, %v880_v11  ;;  %v977_v37 = vand.u32 2147483648, %v880_v11 }
  0xdb   : > { %v1134_v18 = vmul.f32 %v949_v17, %v2059_v52  ;;  %v953_v19 = vsub.f32 1.0, %v952_v15  ;;  %v1337_v48 = vsel %vm1324_vm5, %v1312_v45, 0.0  ;;  %vm971_vm10 = vweird.f32 %v880_v11 }
  0xdc   : > { %v618_v42 = vpop.f32.mrf.mxu0  ;;  %1338 = vadd.xlane.f32.xlu2 %v1337_v48  ;;  %vm976_vm12 = vcmp.eq.f32.partialorder %v975_v46, 8.507059e+37  ;;  %v978_v57 = vor.u32 1.1754944e-38, %v977_v37  ;;  %v1313_v9 = vsel %vm2079_vm4, %v1297_v4, 0.0  ;;  %v808_v46 = vadd.f32 %v2075_v3, %v2149_v27 }
  0xdd   : > { %v954_v22 = vmul.f32 %v1783_v8, %v953_v19  ;;  %v1150_v24 = vmul.f32 %v1134_v18, %v802_v20  ;;  %v2147_v25 = vadd.f32 %v2034_v26, %v618_v42  ;;  %v2176_v60 = vpop.f32.mrf.mxu1  ;;  %v1340_v10 = vsel %vm1324_vm5, %v1313_v9, 0.0 }
  0xdf   : > { %v1785_v52 = vpop.eup %1784  ;;  %v955_v28 = vadd.f32 %v1783_v8, %v954_v22  ;;  %v1660_v61 = vmul.f32 -1.442695, %v2147_v25  ;;  %v1164_v32 = vpack.c.bf16 %v1150_v24, %v1149_v23 }
  0xe0   : > { %v1787_v33 = vpop.eup %1786  ;;  %v2153_v29 = vadd.f32 1.0, %v1785_v52 }
  0xe1   : > { %v967_v36 = vmul.f32 %v1787_v33, %v880_v11  ;;  %1788 = vpow2.f32 %v1660_v61  ;;  %1252 = vmatmul.bf16.gmra.mxu2 %v1164_v32  ;;  %v959_v40 = vsel %vm2160_vm7, %v1783_v8, %v955_v28  ;;  %vm972_vm9 = vweird.f32 %v1787_v33 }
  0xe2   : > { %1790 = vrcp.f32 %v2153_v29  ;;  %v964_v51 = vsel %vm961_vm8, %v963_v35, %v959_v40  ;;  %vm973_vm11 = vmor %vm971_vm10, %vm972_vm9  ;;  %v992_v19 = vand.u32 2147483648, %v2153_v29  ;;  %vm986_vm14 = vweird.f32 %v2153_v29 }
  0xe3   : > { %v968_v44 = vsub.f32 1.0, %v967_v36  ;;  %v1135_v63 = vmul.f32 %v964_v51, %v2086_v13  ;;  %v990_v43 = vand.u32 2147483647, %v2153_v29  ;;  %v1314_v28 = vsel %vm2079_vm4, %v1298_v21, 0.0  ;;  %v1299_v51 = vld [vmem:[%s2502_s1 + $0x38] sm:$0xff] }
  0xe4   : > { %v621_v47 = vpop.f32.mrf.mxu0  ;;  %1341 = vadd.xlane.f32.xlu2 %v1340_v10  ;;  %v993_v61 = vor.u32 1.1754944e-38, %v992_v19  ;;  %v1315_v27 = vsel %vm2079_vm4, %v1299_v51, 0.0  ;;  %v1300_v10 = vld [vmem:[%s2502_s1 + $0x40] sm:$0xff] }
  0xe5   : > { %v969_v49 = vmul.f32 %v1787_v33, %v968_v44  ;;  %v2171_v50 = vadd.f32 %v2034_v26, %v621_v47  ;;  %v1151_v12 = vmul.f32 %v1135_v63, %v804_v58  ;;  %v2206_v23 = vpop.f32.mrf.mxu1  ;;  %vm991_vm0 = vcmp.eq.f32.partialorder %v990_v43, 8.507059e+37 }
  0xe6   : > { %v1346_v58 = vsel %vm1324_vm5, %v1315_v27, 0.0 }
  0xe7   : > { %v1789_v53 = vpop.eup %1788  ;;  %v970_v54 = vadd.f32 %v1787_v33, %v969_v49  ;;  %v1661_v55 = vmul.f32 -1.442695, %v2171_v50  ;;  %1347 = vadd.xlane.f32.xlu1 %v1346_v58  ;;  %v1302_v58 = vld [vmem:[%s2502_s1 + $0x50] sm:$0xff] }
  0xe8   : > { %v1791_v56 = vpop.eup %1790  ;;  %v882_v59 = vadd.f32 1.0, %v1789_v53 }
  0xe9   : > { %v974_v0 = vsel %vm973_vm11, %v1787_v33, %v970_v54  ;;  %v982_v2 = vmul.f32 %v1791_v56, %v2153_v29  ;;  %1792 = vpow2.f32 %v1661_v55  ;;  %vm987_vm13 = vweird.f32 %v1791_v56 }
  0xea   : > { %v979_v5 = vsel %vm976_vm12, %v978_v57, %v974_v0  ;;  %1794 = vrcp.f32 %v882_v59  ;;  %vm2201_vm15 = vmor %vm986_vm14, %vm987_vm13  ;;  %v1005_v32 = vand.u32 2147483647, %v882_v59  ;;  %v1007_v33 = vand.u32 2147483648, %v882_v59 }
  0xeb   : > { %v1136_v6 = vmul.f32 %v979_v5, %v2106_v41  ;;  %v983_v8 = vsub.f32 1.0, %v982_v2  ;;  %v1343_v29 = vsel %vm1324_vm5, %v1314_v28, 0.0  ;;  %vm1001_vm2 = vweird.f32 %v882_v59 }
  0xec   : > { %v623_v13 = vpop.f32.mrf.mxu0  ;;  %1344 = vadd.xlane.f32.xlu0 %v1343_v29  ;;  %vm1006_vm6 = vcmp.eq.f32.partialorder %v1005_v32, 8.507059e+37  ;;  %v1008_v35 = vor.u32 1.1754944e-38, %v1007_v33  ;;  %v812_v32 = vadd.f32 %v2075_v3, %v2206_v23 }
  0xed   : > { %v984_v11 = vmul.f32 %v1791_v56, %v983_v8  ;;  %v1152_v14 = vmul.f32 %v1136_v6, %v806_v30  ;;  %v2190_v15 = vadd.f32 %v2034_v26, %v623_v13  ;;  %v672_v57 = vpop.f32.mrf.mxu1 }
  0xef   : > { %v1793_v16 = vpop.eup %1792  ;;  %v985_v17 = vadd.f32 %v1791_v56, %v984_v11  ;;  %v1662_v41 = vmul.f32 -1.442695, %v2190_v15  ;;  %v1165_v18 = vpack.c.bf16 %v1152_v14, %v1151_v12 }
  0xf0   : > { %v1795_v62 = vpop.eup %1794  ;;  %v2194_v20 = vadd.f32 1.0, %v1793_v16  ;;  %v1316_v16 = vsel %vm2079_vm4, %v1300_v10, 0.0 }
  0xf1   : > { %v997_v42 = vmul.f32 %v1795_v62, %v882_v59  ;;  %1796 = vpow2.f32 %v1662_v41  ;;  %1257 = vmatmul.bf16.gmra.mxu2 %v1165_v18  ;;  %v989_v24 = vsel %vm2201_vm15, %v1791_v56, %v985_v17  ;;  %vm1002_vm1 = vweird.f32 %v1795_v62 }
  0xf2   : > { %1798 = vrcp.f32 %v2194_v20  ;;  %v994_v38 = vsel %vm991_vm0, %v993_v61, %v989_v24  ;;  %vm1003_vm3 = vmor %vm1001_vm2, %vm1002_vm1  ;;  %v810_v56 = vadd.f32 %v2075_v3, %v2176_v60  ;;  %v1022_v8 = vand.u32 2147483648, %v2194_v20 }
  0xf3   : > { %v998_v52 = vsub.f32 1.0, %v997_v42  ;;  %v1137_v47 = vmul.f32 %v994_v38, %v2130_v1  ;;  %vm1016_vm8 = vweird.f32 %v2194_v20  ;;  %v1020_v9 = vand.u32 2147483647, %v2194_v20  ;;  %v1301_v38 = vld [vmem:[%s2502_s1 + $0x48] sm:$0xff] }
  0xf4   : > { %v626_v31 = vpop.f32.mrf.mxu0  ;;  %v1023_v17 = vor.u32 1.1754944e-38, %v1022_v8  ;;  %v1349_v19 = vsel %vm1324_vm5, %v1316_v16, 0.0  ;;  %v1317_v23 = vsel %vm2079_vm4, %v1301_v38, 0.0 }
  0xf5   : > { %v999_v34 = vmul.f32 %v1795_v62, %v998_v52  ;;  %v2214_v36 = vadd.f32 %v2034_v26, %v626_v31  ;;  %v1153_v63 = vmul.f32 %v1137_v47, %v808_v46  ;;  %vm1021_vm10 = vcmp.eq.f32.partialorder %v1020_v9, 8.507059e+37  ;;  %1350 = vadd.xlane.f32.xlu2 %v1349_v19  ;;  %v2255_v21 = vpop.f32.mrf.mxu1 }
  0xf7   : > { %v1797_v39 = vpop.eup %1796  ;;  %v1000_v40 = vadd.f32 %v1795_v62, %v999_v34  ;;  %v1663_v44 = vmul.f32 -1.442695, %v2214_v36 }
  0xf8   : > { %v1799_v45 = vpop.eup %1798  ;;  %v884_v37 = vadd.f32 1.0, %v1797_v39 }
  0xf9   : > { %v1004_v48 = vsel %vm1003_vm3, %v1795_v62, %v1000_v40  ;;  %v1012_v49 = vmul.f32 %v1799_v45, %v2194_v20  ;;  %1800 = vpow2.f32 %v1663_v44  ;;  %vm1017_vm7 = vweird.f32 %v1799_v45 }
  0xfa   : > { %v1009_v53 = vsel %vm1006_vm6, %v1008_v35, %v1004_v48  ;;  %1802 = vrcp.f32 %v884_v37  ;;  %vm2242_vm9 = vmor %vm1016_vm8, %vm1017_vm7  ;;  %v1035_v41 = vand.u32 2147483647, %v884_v37  ;;  %v1037_v18 = vand.u32 2147483648, %v884_v37 }
  0xfb   : > { %v1138_v54 = vmul.f32 %v1009_v53, %v2147_v25  ;;  %v1013_v55 = vsub.f32 1.0, %v1012_v49  ;;  %vm1031_vm12 = vweird.f32 %v884_v37 }
  0xfc   : > { %v628_v1 = vpop.f32.mrf.mxu0  ;;  %vm1036_vm14 = vcmp.eq.f32.partialorder %v1035_v41, 8.507059e+37  ;;  %v1038_v61 = vor.u32 1.1754944e-38, %v1037_v18 }
  0xfd   : > { %v1014_v59 = vmul.f32 %v1799_v45, %v1013_v55  ;;  %v1154_v0 = vmul.f32 %v1138_v54, %v810_v56  ;;  %v2231_v2 = vadd.f32 %v2034_v26, %v628_v1  ;;  %v677_v27 = vpop.f32.mrf.mxu1 }
  0xff   : > { %v1801_v4 = vpop.eup %1800  ;;  %v1015_v25 = vadd.f32 %v1799_v45, %v1014_v59  ;;  %v1664_v5 = vmul.f32 -1.442695, %v2231_v2  ;;  %v1166_v60 = vpack.c.bf16 %v1154_v0, %v1153_v63 }
 0x100   : > { %v1803_v6 = vpop.eup %1802  ;;  %v2235_v30 = vadd.f32 1.0, %v1801_v4  ;;  %v1318_v4 = vsel %vm2079_vm4, %v1302_v58, 0.0 }
 0x101   : > { %v1027_v13 = vmul.f32 %v1803_v6, %v884_v37  ;;  %1804 = vpow2.f32 %v1664_v5  ;;  %1262 = vmatmul.bf16.gmra.mxu2 %v1166_v60  ;;  %v1019_v12 = vsel %vm2242_vm9, %v1799_v45, %v1015_v25  ;;  %vm1032_vm11 = vweird.f32 %v1803_v6 }
 0x102   : > { %1806 = vrcp.f32 %v2235_v30  ;;  %v1024_v42 = vsel %vm1021_vm10, %v1023_v17, %v1019_v12  ;;  %vm1033_vm13 = vmor %vm1031_vm12, %vm1032_vm11  ;;  %v814_v45 = vadd.f32 %v2075_v3, %v672_v57  ;;  %v1052_v55 = vand.u32 2147483648, %v2235_v30 }
 0x103   : > { %v1028_v14 = vsub.f32 1.0, %v1027_v13  ;;  %v1139_v31 = vmul.f32 %v1024_v42, %v2171_v50  ;;  %v1352_v50 = vsel %vm1324_vm5, %v1317_v23, 0.0  ;;  %vm1046_vm0 = vweird.f32 %v2235_v30 }
 0x104   : > { %v631_v62 = vpop.f32.mrf.mxu0  ;;  %1353 = vadd.xlane.f32.xlu0 %v1352_v50  ;;  %v1050_v1 = vand.u32 2147483647, %v2235_v30  ;;  %v1053_v25 = vor.u32 1.1754944e-38, %v1052_v55  ;;  %v1355_v8 = vsel %vm1324_vm5, %v1318_v4, 0.0  ;;  %v816_v17 = vadd.f32 %v2075_v3, %v2255_v21  ;;  %v1305_v50 = vld [vmem:[%s2502_s1 + $0x68] sm:$0xff] }
 0x105   : > { %v1029_v20 = vmul.f32 %v1803_v6, %v1028_v14  ;;  %v2253_v43 = vadd.f32 %v2034_v26, %v631_v62  ;;  %v1155_v37 = vmul.f32 %v1139_v31, %v812_v32  ;;  %1356 = vadd.xlane.f32.xlu1 %v1355_v8  ;;  %v818_v21 = vadd.f32 %v2075_v3, %v677_v27 }
 0x106   : > { %vm1051_vm2 = vcmp.eq.f32.partialorder %v1050_v1, 8.507059e+37  ;;  %v1321_v27 = vsel %vm2079_vm4, %v1305_v50, 0.0 }
 0x107   : > { %v1805_v22 = vpop.eup %1804  ;;  %v1030_v24 = vadd.f32 %v1803_v6, %v1029_v20  ;;  %v1665_v52 = vmul.f32 -1.442695, %v2253_v43  ;;  %v1303_v20 = vld [vmem:[%s2502_s1 + $0x58] sm:$0xff]  ;;  %v1364_v59 = vsel %vm1324_vm5, %v1321_v27, 0.0 }
 0x108   : > { %v1807_v28 = vpop.eup %1806  ;;  %v886_v33 = vadd.f32 1.0, %v1805_v22  ;;  %v680_v22 = vpop.f32.mrf.mxu1 }
 0x109   : > { %v1034_v29 = vsel %vm1033_vm13, %v1803_v6, %v1030_v24  ;;  %v1042_v34 = vmul.f32 %v1807_v28, %v2235_v30  ;;  %1808 = vpow2.f32 %v1665_v52  ;;  %vm1047_vm15 = vweird.f32 %v1807_v28 }
 0x10a   : > { %v1039_v39 = vsel %vm1036_vm14, %v1038_v61, %v1034_v29  ;;  %1810 = vrcp.f32 %v886_v33  ;;  %vm2282_vm1 = vmor %vm1046_vm0, %vm1047_vm15  ;;  %v1065_v5 = vand.u32 2147483647, %v886_v33  ;;  %v1067_v60 = vand.u32 2147483648, %v886_v33 }
 0x10b   : > { %v1140_v40 = vmul.f32 %v1039_v39, %v2190_v15  ;;  %v1043_v44 = vsub.f32 1.0, %v1042_v34  ;;  %vm1061_vm6 = vweird.f32 %v886_v33 }
 0x10c   : > { %v633_v35 = vpop.f32.mrf.mxu0  ;;  %vm1066_vm8 = vcmp.eq.f32.partialorder %v1065_v5, 8.507059e+37  ;;  %v1068_v16 = vor.u32 1.1754944e-38, %v1067_v60 }
 0x10d   : > { %v1044_v46 = vmul.f32 %v1807_v28, %v1043_v44  ;;  %v1156_v47 = vmul.f32 %v1140_v40, %v814_v45  ;;  %v2271_v48 = vadd.f32 %v2034_v26, %v633_v35  ;;  %1365 = vadd.xlane.f32.xlu1 %v1364_v59  ;;  %v1375_v59 = vld [vmem:[%s2507_s6 + $0x10] sm:$0xff] }
 0x10f   : > { %v1809_v49 = vpop.eup %1808  ;;  %v1045_v51 = vadd.f32 %v1807_v28, %v1044_v46  ;;  %v1666_v15 = vmul.f32 -1.442695, %v2271_v48  ;;  %v1167_v53 = vpack.c.bf16 %v1156_v47, %v1155_v37  ;;  %v1306_v46 = vld [vmem:[%s2502_s1 + $0x70] sm:$0xff]  ;;  %v2378_v37 = vld [vmem:[%s390_s13] ss:$0 sm:$0xff]  ;;  %v1327_v47 = vpop.xlane.xlu0 %1326 }
 0x110   : > { %v1811_v54 = vpop.eup %1810  ;;  %v2275_v56 = vadd.f32 1.0, %v1809_v49  ;;  %v682_v55 = vpop.f32.mrf.mxu1  ;;  %v1322_v1 = vsel %vm2079_vm4, %v1306_v46, 0.0 }
 0x111   : > { %v1057_v57 = vmul.f32 %v1811_v54, %v886_v33  ;;  %1812 = vpow2.f32 %v1666_v15  ;;  %1267 = vmatmul.bf16.gmra.mxu2 %v1167_v53  ;;  %v1049_v63 = vsel %vm2282_vm1, %v1807_v28, %v1045_v51  ;;  %vm1062_vm3 = vweird.f32 %v1811_v54 }
 0x112   : > { %1814 = vrcp.f32 %v2275_v56  ;;  %v1054_v13 = vsel %vm1051_vm2, %v1053_v25, %v1049_v63  ;;  %vm1063_vm7 = vmor %vm1061_vm6, %vm1062_vm3  ;;  %v1080_v34 = vand.u32 2147483647, %v2275_v56  ;;  %vm1076_vm10 = vweird.f32 %v2275_v56 }
 0x113   : > { %v1058_v0 = vsub.f32 1.0, %v1057_v57  ;;  %v1141_v18 = vmul.f32 %v1054_v13, %v2214_v36  ;;  %v1319_v36 = vsel %vm2079_vm4, %v1303_v20, 0.0 }
 0x114   : > { %v636_v6 = vpop.f32.mrf.mxu0  ;;  %v1358_v61 = vsel %vm1324_vm5, %v1319_v36, 0.0  ;;  %vm2334_vm12 = vcmp.eq.f32.partialorder %v1080_v34, 8.507059e+37 }
 0x115   : > { %v1059_v30 = vmul.f32 %v1811_v54, %v1058_v0  ;;  %v2293_v9 = vadd.f32 %v2034_v26, %v636_v6  ;;  %v1157_v33 = vmul.f32 %v1141_v18, %v816_v17  ;;  %1359 = vadd.xlane.f32.xlu2 %v1358_v61  ;;  %v1367_v0 = vsel %vm1324_vm5, %v1322_v1, 0.0 }
 0x116   : > { %v820_v6 = vadd.f32 %v2075_v3, %v680_v22 }
 0x117   : > { %v1813_v10 = vpop.eup %1812  ;;  %v1060_v11 = vadd.f32 %v1811_v54, %v1059_v30  ;;  %v1667_v12 = vmul.f32 -1.442695, %v2293_v9 }
 0x118   : > { %v1815_v14 = vpop.eup %1814  ;;  %v2298_v41 = vadd.f32 1.0, %v1813_v10 }
 0x119   : > { %v1064_v62 = vsel %vm1063_vm7, %v1811_v54, %v1060_v11  ;;  %v1072_v19 = vmul.f32 %v1815_v14, %v2275_v56  ;;  %1816 = vpow2.f32 %v1667_v12  ;;  %vm1077_vm9 = vweird.f32 %v1815_v14 }
 0x11a   : > { %v1069_v42 = vsel %vm1066_vm8, %v1068_v16, %v1064_v62  ;;  %1818 = vrcp.f32 %v2298_v41  ;;  %vm2330_vm11 = vmor %vm1076_vm10, %vm1077_vm9  ;;  %v1097_v54 = vand.u32 2147483648, %v2298_v41  ;;  %v1095_v58 = vand.u32 2147483647, %v2298_v41  ;;  %v685_v62 = vpop.f32.mrf.mxu1 }
 0x11b   : > { %v1142_v24 = vmul.f32 %v1069_v42, %v2231_v2  ;;  %v1073_v52 = vsub.f32 1.0, %v1072_v19  ;;  %v1082_v2 = vand.u32 2147483648, %v2275_v56  ;;  %vm1091_vm14 = vweird.f32 %v2298_v41 }
 0x11c   : > { %v638_v28 = vpop.f32.mrf.mxu0  ;;  %v1098_v60 = vor.u32 1.1754944e-38, %v1097_v54  ;;  %vm1096_vm0 = vcmp.eq.f32.partialorder %v1095_v58, 8.507059e+37  ;;  %v822_v16 = vadd.f32 %v2075_v3, %v682_v55  ;;  %v1374_v55 = vld [vmem:[%s2507_s6 + $0x8] sm:$0xff] }
 0x11d   : > { %v1074_v32 = vmul.f32 %v1815_v14, %v1073_v52  ;;  %v1158_v31 = vmul.f32 %v1142_v24, %v818_v21  ;;  %v2312_v29 = vadd.f32 %v2034_v26, %v638_v28  ;;  %v1304_v26 = vld [vmem:[%s2502_s1 + $0x60] sm:$0xff]  ;;  %v1083_v51 = vor.u32 1.1754944e-38, %v1082_v2  ;;  %1368 = vadd.xlane.f32.xlu2 %v1367_v0 }
 0x11e   : > { %v1320_v53 = vsel %vm2079_vm4, %v1304_v26, 0.0 }
 0x11f   : > { %v1817_v38 = vpop.eup %1816  ;;  %v1075_v39 = vadd.f32 %v1815_v14, %v1074_v32  ;;  %v1668_v40 = vmul.f32 -1.442695, %v2312_v29  ;;  %v1168_v44 = vpack.c.bf16 %v1158_v31, %v1157_v33  ;;  %v1361_v56 = vsel %vm1324_vm5, %v1320_v53, 0.0 }
 0x120   : > { %v1819_v45 = vpop.eup %1818  ;;  %v2317_v23 = vadd.f32 1.0, %v1817_v38  ;;  %1362 = vadd.xlane.f32.xlu0 %v1361_v56 }
 0x121   : > { %v1087_v35 = vmul.f32 %v1819_v45, %v2298_v41  ;;  %1820 = vpow2.f32 %v1668_v40  ;;  %1272 = vmatmul.bf16.gmra.mxu2 %v1168_v44  ;;  %v1079_v49 = vsel %vm2330_vm11, %v1815_v14, %v1075_v39  ;;  %vm1092_vm13 = vweird.f32 %v1819_v45  ;;  %v1307_v40 = vld [vmem:[%s2502_s1 + $0x78] sm:$0xff] }
 0x122   : > { %1822 = vrcp.f32 %v2317_v23  ;;  %v1084_v63 = vsel %vm2334_vm12, %v1083_v51, %v1079_v49  ;;  %vm1093_vm15 = vmor %vm1091_vm14, %vm1092_vm13  ;;  %vm1106_vm2 = vweird.f32 %v2317_v23  ;;  %v1110_v22 = vand.u32 2147483647, %v2317_v23  ;;  %v687_v34 = vpop.f32.mrf.mxu1 }
 0x123   : > { %v1088_v15 = vsub.f32 1.0, %v1087_v35  ;;  %v1143_v30 = vmul.f32 %v1084_v63, %v2253_v43  ;;  %v1112_v43 = vand.u32 2147483648, %v2317_v23  ;;  %v824_v39 = vadd.f32 %v2075_v3, %v685_v62 }
 0x124   : > { %vm1111_vm6 = vcmp.eq.f32.partialorder %v1110_v22, 8.507059e+37  ;;  %v826_v35 = vadd.f32 %v2075_v3, %v687_v34  ;;  %v1373_v3 = vld [vmem:[%s2507_s6] sm:$0xff]  ;;  %v1379_v22 = vld [vmem:[%s2507_s6 + $0x30] sm:$0xff] }
 0x125   : > { %v1089_v57 = vmul.f32 %v1819_v45, %v1088_v15  ;;  %v1159_v41 = vmul.f32 %v1143_v30, %v820_v6  ;;  %v1113_v21 = vor.u32 1.1754944e-38, %v1112_v43 }
 0x127   : > { %v1821_v4 = vpop.eup %1820  ;;  %v1090_v25 = vadd.f32 %v1819_v45, %v1089_v57 }
 0x128   : > { %v1823_v5 = vpop.eup %1822  ;;  %v890_v8 = vadd.f32 1.0, %v1821_v4 }
 0x129   : > { %v1094_v13 = vsel %vm1093_vm15, %v1819_v45, %v1090_v25  ;;  %v1102_v10 = vmul.f32 %v1823_v5, %v2317_v23  ;;  %vm1107_vm1 = vweird.f32 %v1823_v5  ;;  %v1323_v45 = vsel %vm2079_vm4, %v1307_v40, 0.0 }
 0x12a   : > { %v1099_v11 = vsel %vm1096_vm0, %v1098_v60, %v1094_v13  ;;  %1824 = vrcp.f32 %v890_v8  ;;  %vm1108_vm3 = vmor %vm1106_vm2, %vm1107_vm1  ;;  %v1127_v36 = vand.u32 2147483648, %v890_v8  ;;  %v1125_v61 = vand.u32 2147483647, %v890_v8  ;;  %v1376_v60 = vld [vmem:[%s2507_s6 + $0x18] sm:$0xff] }
 0x12b   : > { %v1144_v12 = vmul.f32 %v1099_v11, %v2271_v48  ;;  %v1103_v14 = vsub.f32 1.0, %v1102_v10  ;;  %vm1121_vm8 = vweird.f32 %v890_v8  ;;  %v1370_v26 = vsel %vm1324_vm5, %v1323_v45, 0.0  ;;  %v1377_v11 = vld [vmem:[%s2507_s6 + $0x20] sm:$0xff] }
 0x12c   : > { %v1128_v31 = vor.u32 1.1754944e-38, %v1127_v36  ;;  %vm1126_vm10 = vcmp.eq.f32.partialorder %v1125_v61, 8.507059e+37  ;;  %1371 = vadd.xlane.f32.xlu0 %v1370_v26 }
 0x12d   : > { %v1104_v17 = vmul.f32 %v1823_v5, %v1103_v14  ;;  %v1160_v18 = vmul.f32 %v1144_v12, %v822_v16 }
 0x12f   : > { %v1105_v19 = vadd.f32 %v1823_v5, %v1104_v17  ;;  %v1169_v20 = vpack.c.bf16 %v1160_v18, %v1159_v41  ;;  %v1378_v18 = vld [vmem:[%s2507_s6 + $0x28] sm:$0xff] }
 0x130   : > { %v1825_v42 = vpop.eup %1824 }
 0x131   : > { %v1117_v24 = vmul.f32 %v1825_v42, %v890_v8  ;;  %1277 = vmatmul.bf16.vlgmr.msra.gmra.mxu3 %v1169_v20  ;;  %v1109_v48 = vsel %vm1108_vm3, %v1823_v5, %v1105_v19  ;;  %vm1122_vm7 = vweird.f32 %v1825_v42 }
 0x132   : > { %v1114_v32 = vsel %vm1111_vm6, %v1113_v21, %v1109_v48  ;;  %vm1123_vm9 = vmor %vm1121_vm8, %vm1122_vm7 }
 0x133   : > { %v1118_v52 = vsub.f32 1.0, %v1117_v24  ;;  %v1145_v2 = vmul.f32 %v1114_v32, %v2293_v9 }
 0x135   : > { %v1119_v28 = vmul.f32 %v1825_v42, %v1118_v52  ;;  %v1161_v9 = vmul.f32 %v1145_v2, %v824_v39  ;;  %v1381_v2 = vld [vmem:[%s2507_s6 + $0x40] sm:$0xff] }
 0x137   : > { %v1120_v33 = vadd.f32 %v1825_v42, %v1119_v28  ;;  %v1380_v28 = vld [vmem:[%s2507_s6 + $0x38] sm:$0xff] }
 0x138   : > { %v1330_v53 = vpop.xlane.xlu0 %1329 }
 0x139   : > { %v1124_v38 = vsel %vm1123_vm9, %v1825_v42, %v1120_v33  ;;  %v1333_v1 = vpop.xlane.xlu1 %1332 }
 0x13a   : > { %v1129_v44 = vsel %vm1126_vm10, %v1128_v31, %v1124_v38 }
 0x13b   : > { %v1146_v23 = vmul.f32 %v1129_v44, %v2312_v29 }
 0x13d   : > { %v1162_v50 = vmul.f32 %v1146_v23, %v826_v35  ;;  %v1382_v23 = vld [vmem:[%s2507_s6 + $0x48] sm:$0xff] }
 0x13f   : > { %v1170_v46 = vpack.c.bf16 %v1162_v50, %v1161_v9 }
 0x141   : > { %1282 = vmatmul.bf16.gmra.mxu3 %v1170_v46  ;;  %v1336_v25 = vpop.xlane.xlu1 %1335 }
 0x14f   : > { %v1339_v30 = vpop.xlane.xlu2 %1338 }
 0x154   : > { %v1248_v7 = vpop.f32.mrf.mxu2 }
 0x155   : > { %v1249_v49 = vadd.f32 %v2378_v37, %v1248_v7 }
 0x157   : > { %v1389_v29 = vmul.f32 %v1327_v47, %v1249_v49  ;;  %v1342_v17 = vpop.xlane.xlu2 %1341  ;;  %v1383_v47 = vld [vmem:[%s2507_s6 + $0x50] sm:$0xff] }
 0x159   : > { %v1405_v51 = vadd.f32 %v1389_v29, %v1373_v3 }
 0x15a   : > { %v1348_v21 = vpop.xlane.xlu1 %1347 }
 0x15b   : > { %1421 = vst [vmem:[%s2507_s6] sm:$0xff] %v1405_v51 }
 0x15c   : > { %v1250_v15 = vpop.f32.mrf.mxu2 }
 0x15d   : > { %v1251_v54 = vadd.f32 %v2378_v37, %v1250_v15  ;;  %v1384_v15 = vld [vmem:[%s2507_s6 + $0x58] sm:$0xff] }
 0x15f   : > { %v1390_v56 = vmul.f32 %v1330_v53, %v1251_v54  ;;  %v1345_v42 = vpop.xlane.xlu0 %1344 }
 0x161   : > { %v1406_v27 = vadd.f32 %v1390_v56, %v1374_v55 }
 0x163   : > { %1422 = vst [vmem:[%s2507_s6 + $0x8] sm:$0xff] %v1406_v27 }
 0x164   : > { %v1253_v57 = vpop.f32.mrf.mxu2 }
 0x165   : > { %v1254_v58 = vadd.f32 %v2378_v37, %v1253_v57 }
 0x167   : > { %v1391_v63 = vmul.f32 %v1333_v1, %v1254_v58  ;;  %v1385_v1 = vld [vmem:[%s2507_s6 + $0x60] sm:$0xff] }
 0x168   : > { %v1351_v31 = vpop.xlane.xlu2 %1350 }
 0x169   : > { %v1407_v0 = vadd.f32 %v1391_v63, %v1375_v59 }
 0x16b   : > { %1423 = vst [vmem:[%s2507_s6 + $0x10] sm:$0xff] %v1407_v0 }
 0x16c   : > { %v1255_v4 = vpop.f32.mrf.mxu2 }
 0x16d   : > { %v1256_v5 = vadd.f32 %v2378_v37, %v1255_v4  ;;  %v1386_v4 = vld [vmem:[%s2507_s6 + $0x68] sm:$0xff] }
 0x16f   : > { %v1392_v6 = vmul.f32 %v1336_v25, %v1256_v5 }
 0x171   : > { %v1408_v8 = vadd.f32 %v1392_v6, %v1376_v60 }
 0x173   : > { %1424 = vst [vmem:[%s2507_s6 + $0x18] sm:$0xff] %v1408_v8 }
 0x174   : > { %v1258_v13 = vpop.f32.mrf.mxu2 }
 0x175   : > { %v1259_v10 = vadd.f32 %v2378_v37, %v1258_v13 }
 0x177   : > { %v1393_v12 = vmul.f32 %v1339_v30, %v1259_v10  ;;  %v1354_v44 = vpop.xlane.xlu0 %1353  ;;  %v1387_v30 = vld [vmem:[%s2507_s6 + $0x70] sm:$0xff] }
 0x178   : > { %v1357_v50 = vpop.xlane.xlu1 %1356 }
 0x179   : > { %v1409_v14 = vadd.f32 %v1393_v12, %v1377_v11 }
 0x17b   : > { %1425 = vst [vmem:[%s2507_s6 + $0x20] sm:$0xff] %v1409_v14 }
 0x17c   : > { %v1260_v16 = vpop.f32.mrf.mxu2 }
 0x17d   : > { %v1261_v41 = vadd.f32 %v2378_v37, %v1260_v16  ;;  %v1388_v16 = vld [vmem:[%s2507_s6 + $0x78] sm:$0xff] }
 0x17f   : > { %v1394_v62 = vmul.f32 %v1342_v17, %v1261_v41 }
 0x180   : > { %v1366_v63 = vpop.xlane.xlu1 %1365 }
 0x181   : > { %v1410_v19 = vadd.f32 %v1394_v62, %v1378_v18 }
 0x183   : > { %1426 = vst [vmem:[%s2507_s6 + $0x28] sm:$0xff] %v1410_v19 }
 0x184   : > { %v1263_v20 = vpop.f32.mrf.mxu2 }
 0x185   : > { %v1264_v43 = vadd.f32 %v2378_v37, %v1263_v20 }
 0x187   : > { %v1395_v24 = vmul.f32 %v1345_v42, %v1264_v43 }
 0x188   : > { %v1360_v29 = vpop.xlane.xlu2 %1359 }
 0x189   : > { %v1411_v48 = vadd.f32 %v1395_v24, %v1379_v22 }
 0x18b   : > { %1427 = vst [vmem:[%s2507_s6 + $0x30] sm:$0xff] %v1411_v48 }
 0x18c   : > { %v1265_v52 = vpop.f32.mrf.mxu2 }
 0x18d   : > { %v1266_v36 = vadd.f32 %v2378_v37, %v1265_v52 }
 0x18f   : > { %v1396_v61 = vmul.f32 %v1348_v21, %v1266_v36 }
 0x190   : > { %v1369_v6 = vpop.xlane.xlu2 %1368 }
 0x191   : > { %v1412_v32 = vadd.f32 %v1396_v61, %v1380_v28 }
 0x193   : > { %1428 = vst [vmem:[%s2507_s6 + $0x38] sm:$0xff] %v1412_v32  ;;  %v1363_v56 = vpop.xlane.xlu0 %1362 }
 0x194   : > { %v1268_v33 = vpop.f32.mrf.mxu2 }
 0x195   : > { %v1269_v34 = vadd.f32 %v2378_v37, %v1268_v33 }
 0x197   : > { %v1397_v38 = vmul.f32 %v1351_v31, %v1269_v34 }
 0x199   : > { %v1413_v39 = vadd.f32 %v1397_v38, %v1381_v2 }
 0x19b   : > { %1429 = vst [vmem:[%s2507_s6 + $0x40] sm:$0xff] %v1413_v39 }
 0x19c   : > { %v1270_v40 = vpop.f32.mrf.mxu2 }
 0x19d   : > { %v1271_v45 = vadd.f32 %v2378_v37, %v1270_v40 }
 0x19f   : > { %v1398_v35 = vmul.f32 %v1354_v44, %v1271_v45  ;;  %v1372_v12 = vpop.xlane.xlu0 %1371 }
 0x1a1   : > { %v1414_v26 = vadd.f32 %v1398_v35, %v1382_v23 }
 0x1a3   : > { %1430 = vst [vmem:[%s2507_s6 + $0x48] sm:$0xff] %v1414_v26 }
 0x1a4   : > { %v1273_v9 = vpop.f32.mrf.mxu2 }
 0x1a5   : > { %v1274_v46 = vadd.f32 %v2378_v37, %v1273_v9 }
 0x1a7   : > { %v1399_v7 = vmul.f32 %v1357_v50, %v1274_v46 }
 0x1a9   : > { %v1415_v49 = vadd.f32 %v1399_v7, %v1383_v47 }
 0x1ab   : > { %1431 = vst [vmem:[%s2507_s6 + $0x50] sm:$0xff] %v1415_v49 }
 0x1ac   : > { %v1275_v3 = vpop.f32.mrf.mxu2 }
 0x1ad   : > { %v1276_v51 = vadd.f32 %v2378_v37, %v1275_v3 }
 0x1af   : > { %v1400_v53 = vmul.f32 %v1360_v29, %v1276_v51 }
 0x1b1   : > { %v1416_v54 = vadd.f32 %v1400_v53, %v1384_v15 }
 0x1b3   : > { %1432 = vst [vmem:[%s2507_s6 + $0x58] sm:$0xff] %v1416_v54 }
 0x1b4   : > { %v1278_v55 = vpop.f32.mrf.mxu3 }
 0x1b5   : > { %v1279_v27 = vadd.f32 %v2378_v37, %v1278_v55 }
 0x1b7   : > { %v1401_v57 = vmul.f32 %v1363_v56, %v1279_v27 }
 0x1b9   : > { %v1417_v58 = vadd.f32 %v1401_v57, %v1385_v1 }
 0x1bb   : > { %1433 = vst [vmem:[%s2507_s6 + $0x60] sm:$0xff] %v1417_v58 }
 0x1bc   : > { %v1280_v59 = vpop.f32.mrf.mxu3 }
 0x1bd   : > { %v1281_v0 = vadd.f32 %v2378_v37, %v1280_v59 }
 0x1bf   : > { %v1402_v25 = vmul.f32 %v1366_v63, %v1281_v0 }
 0x1c1   : > { %v1418_v5 = vadd.f32 %v1402_v25, %v1386_v4 }
 0x1c3   : > { %1434 = vst [vmem:[%s2507_s6 + $0x68] sm:$0xff] %v1418_v5 }
 0x1c4   : > { %v1283_v60 = vpop.f32.mrf.mxu3 }
 0x1c5   : > { %v1284_v8 = vadd.f32 %v2378_v37, %v1283_v60 }
 0x1c7   : > { %v1403_v13 = vmul.f32 %v1369_v6, %v1284_v8 }
 0x1c9   : > { %v1419_v10 = vadd.f32 %v1403_v13, %v1387_v30 }
 0x1cb   : > { %1435 = vst [vmem:[%s2507_s6 + $0x70] sm:$0xff] %v1419_v10 }
 0x1cc   : > { %v1285_v11 = vpop.f32.mrf.mxu3 }
 0x1cd   : > { %v1286_v14 = vadd.f32 %v2378_v37, %v1285_v11 }
 0x1cf   : > { %v1404_v17 = vmul.f32 %v1372_v12, %v1286_v14 }
 0x1d1   : > { %v1420_v41 = vadd.f32 %v1404_v17, %v1388_v16 }
 0x1d3   : > { %1436 = vst [vmem:[%s2507_s6 + $0x78] sm:$0xff] %v1420_v41 }
 0x1d4 PF: > { %s16_s23 = sadd.s32 1, %s1848_s23   ;;  %s2526_s21 = smov %s1844_s22 }
 0x1d5   : > { %p13_p6 = scmp.ge.s32.totalorder %s16_s23, 6   ;;  %s2527_s22 = smov %s2529_s24 }
 0x1d7   :  { %15 = sbr.rel (!%p13_p6) target bundleno = 2 (0x2), region = 101 }

</bundles_post_ra>
